<compile_context>
chip_gen: v7x
topology: tpu7x:2x2x1
jax: 0.10.0
libtpu: 0.0.40
codegen_flags: <defaults>
</compile_context>

<pallas_src>
import functools
import math

import jax
import jax.numpy as jnp
from jax import lax
from jax.experimental import pallas as pl
from jax.experimental.pallas import tpu as pltpu


def _masked_network_kernel(*refs, has_adj: bool):
    if has_adj:
        x_ref, w_ref, adj_ref, w2_ref, o_ref, acc_ref = refs
    else:
        x_ref, w_ref, w2_ref, o_ref, acc_ref = refs
        adj_ref = None

    j = pl.program_id(2)

    @pl.when(j == 0)
    def _init():
        acc_ref[...] = jnp.zeros_like(acc_ref)

    w = w_ref[...]
    if adj_ref is not None:
        # Binary adjacency streamed as int8; apply the mask on the VPU.
        w = w * adj_ref[...].astype(w.dtype)

    # x @ W_tile.T without an explicit transpose: contract dim 1 of both.
    h = lax.dot_general(
        x_ref[...], w,
        dimension_numbers=(((1,), (1,)), ((), ())),
        preferred_element_type=jnp.float32,
    )  # (batch_tile, hidden_tile), f32 accumulation
    h = jnp.maximum(h, 0.0)

    # Second layer (1 output unit): broadcast-mul + immediate lane reduce into
    # a tiny (bt, 1) accumulator.
    acc_ref[...] += jnp.sum(h * w2_ref[...], axis=-1, keepdims=True)

    @pl.when(j == pl.num_programs(2) - 1)
    def _finalize():
        o_ref[...] = acc_ref[...].astype(o_ref.dtype)


def _pick_tile(dim, preferred, align):
    """Largest multiple of `align` that divides `dim` and is <= preferred.

    Falls back to the full extent if `dim` is not a multiple of `align`
    (full-extent blocks are always legal)."""
    if dim % align != 0:
        return dim
    t = max(align, (min(preferred, dim) // align) * align)
    while dim % t != 0:
        t -= align
    return t


def masked_network_forward(x, weight, adj, w2, b2, *,
                           hidden_tile=1024, batch_tile=512,
                           hidden_splits=2, use_bf16=False,
                           fold_mask=True,
                           vmem_budget_bytes=40 * 1024 * 1024):
    batch, input_dim = x.shape
    assert weight.shape == (input_dim, input_dim)
    assert adj.shape == (input_dim, input_dim)
    assert w2.shape == (1, input_dim)

    compute_dtype = jnp.bfloat16 if use_bf16 else jnp.float32
    x_bytes = 2 if use_bf16 else 4
    w_bytes = 2 if use_bf16 else 4
    adj_bytes = 0 if fold_mask else 1

    # ---- batch tile: keep nb == 1 whenever possible (W streamed once). ----
    bt = _pick_tile(batch, batch_tile, 8)
    nb = batch // bt if batch % bt == 0 else 1

    # ---- hidden-axis split (core-parallel on v7x megacore parts). ----
    n_splits = max(1, int(hidden_splits))
    if input_dim % n_splits != 0 or (input_dim // n_splits) % 128 != 0:
        n_splits = 1
    d_split = input_dim // n_splits

    # ---- hidden tile sized against an explicit VMEM budget. ----
    x_vmem = 2 * bt * input_dim * x_bytes                       # x block, dbl-buf
    avail = vmem_budget_bytes - x_vmem - (2 << 20)
    max_tj = max(128, avail // (2 * input_dim * (w_bytes + adj_bytes)))
    tj = _pick_tile(d_split, min(int(hidden_tile), int(max_tj)), 128)
    nj = d_split // tj if d_split % tj == 0 else 1

    vmem_need = (2 * tj * input_dim * (w_bytes + adj_bytes)     # W (+adj), dbl-buf
                 + x_vmem
                 + 2 * 8 * max(tj, 128) * 4                     # w2 tile (padded)
                 + 2 * max(bt, 8) * 128 * 4                     # out tile (padded)
                 + 8 * 128 * 4)                                 # acc scratch
    vmem_limit = int(max(vmem_need + (4 << 20), 16 << 20))

    # ---- operand preparation (all casts happen OUTSIDE the kernel so the
    #      streamed HBM bytes actually shrink; amortized when W/adj reused). --
    x_in = x.astype(compute_dtype)
    w2_in = w2.astype(jnp.float32)
    if fold_mask:
        # Exact semantics: mask applied in f32 once, then (optionally) bf16.
        w_in = (weight.astype(jnp.float32) * adj.astype(jnp.float32)).astype(
            compute_dtype)
        operands = (x_in, w_in, w2_in)
    else:
        # int8 adjacency path assumes a binary (0/1) adjacency matrix.
        w_in = weight.astype(compute_dtype)
        adj_in = adj.astype(jnp.int8)
        operands = (x_in, w_in, adj_in, w2_in)

    x_spec = pl.BlockSpec((bt, input_dim), lambda i, s, j: (i, 0))
    w_spec = pl.BlockSpec((tj, input_dim), lambda i, s, j: (s * nj + j, 0))
    w2_spec = pl.BlockSpec((1, tj), lambda i, s, j: (0, s * nj + j))
    if fold_mask:
        in_specs = [x_spec, w_spec, w2_spec]
    else:
        adj_spec = pl.BlockSpec((tj, input_dim), lambda i, s, j: (s * nj + j, 0))
        in_specs = [x_spec, w_spec, adj_spec, w2_spec]

    kernel = functools.partial(_masked_network_kernel, has_adj=not fold_mask)

    cost = pl.CostEstimate(
        flops=2 * batch * input_dim * input_dim + 3 * batch * input_dim,
        transcendentals=0,
        bytes_accessed=(nb * input_dim * input_dim * (w_bytes + adj_bytes)
                        + batch * input_dim * x_bytes
                        + nb * input_dim * 4
                        + batch * n_splits * 4),
    )

    partial_out = pl.pallas_call(
        kernel,
        out_shape=jax.ShapeDtypeStruct((n_splits, batch, 1), jnp.float32),
        grid_spec=pltpu.PrefetchScalarGridSpec(
            num_scalar_prefetch=0,
            grid=(nb, n_splits, nj),
            in_specs=in_specs,
            # One partial output per hidden split; summed (+bias) in wrapper.
            out_specs=pl.BlockSpec((None, bt, 1), lambda i, s, j: (s, i, 0)),
            scratch_shapes=[pltpu.VMEM((bt, 1), jnp.float32)],
        ),
        compiler_params=pltpu.CompilerParams(
            dimension_semantics=("parallel", "parallel", "arbitrary"),
            vmem_limit_bytes=vmem_limit,
        ),
        cost_estimate=cost,
    )(*operands)

    out = jnp.sum(partial_out, axis=0) + b2.reshape(1, 1).astype(jnp.float32)
    return out


def init_params(key, input_dim):
    """Deterministic init mirroring MaskedNetwork.__init__ / reset_parameters."""
    k_w, k_w2, k_b2, k_adj = jax.random.split(key, 4)
    # kaiming_uniform_(weight, a=sqrt(5)) -> bound = 1/sqrt(fan_in)
    bound_w = 1.0 / math.sqrt(input_dim)
    weight = jax.random.uniform(
        k_w, (input_dim, input_dim), jnp.float32, -bound_w, bound_w
    )
    # second_layer = nn.Linear(input_dim, 1): U(-1/sqrt(fan_in), +)
    bound_2 = 1.0 / math.sqrt(input_dim)
    w2 = jax.random.uniform(k_w2, (1, input_dim), jnp.float32, -bound_2, bound_2)
    b2 = jax.random.uniform(k_b2, (1,), jnp.float32, -bound_2, bound_2)
    # Synthetic binary adjacency matrix (the module takes it as an argument).
    adj = jax.random.bernoulli(k_adj, 0.5, (input_dim, input_dim)).astype(
        jnp.float32
    )
    return weight, adj, w2, b2


def reference_forward(x, weight, adj, w2, b2):
    h = jnp.maximum(x @ (weight * adj).T, 0.0)
    return h @ w2.T + b2.reshape(1, 1)


if __name__ == "__main__":
    key = jax.random.PRNGKey(0)
    k_params, k_x = jax.random.split(key)

    batch, input_dim = 8, 512
    weight, adj, w2, b2 = init_params(k_params, input_dim)
    x = jax.random.normal(k_x, (batch, input_dim), jnp.float32)

    ref = reference_forward(x, weight, adj, w2, b2)

    # 1) Default: mask pre-folded outside the kernel (exact, W*adj reusable).
    out_folded = jax.block_until_ready(
        masked_network_forward(x, weight, adj, w2, b2))
    # 2) Streamed int8 adjacency, f32 weights.
    out_streamed = jax.block_until_ready(
        masked_network_forward(x, weight, adj, w2, b2, fold_mask=False))
    # 3) bf16 weights/activations in HBM, f32 accumulation (looser tolerance).
    out_bf16 = jax.block_until_ready(
        masked_network_forward(x, weight, adj, w2, b2, use_bf16=True))

    assert out_folded.shape == (batch, 1)
    assert jnp.allclose(out_folded, ref, atol=1e-4, rtol=1e-4), float(
        jnp.max(jnp.abs(out_folded - ref)))
    assert jnp.allclose(out_streamed, ref, atol=1e-4, rtol=1e-4), float(
        jnp.max(jnp.abs(out_streamed - ref)))
    assert jnp.allclose(out_bf16, ref, atol=5e-2, rtol=5e-2), float(
        jnp.max(jnp.abs(out_bf16 - ref)))

    print("KERNEL_OK")
</pallas_src>

<mosaic_0001>
module attributes {stable_mosaic.version = 11 : i64} {
  func.func @_masked_network_kernel(%arg0: i32, %arg1: i32, %arg2: i32, %arg3: memref<8x512xf32, #tpu.memory_space<vmem>>, %arg4: memref<256x512xf32, #tpu.memory_space<vmem>>, %arg5: memref<1x256xf32, #tpu.memory_space<vmem>>, %arg6: memref<1x8x1xf32, #tpu.memory_space<vmem>>, %arg7: memref<8x1xf32, #tpu.memory_space<vmem>>) attributes {dimension_semantics = [#tpu.dimension_semantics<parallel>, #tpu.dimension_semantics<parallel>, #tpu.dimension_semantics<arbitrary>], iteration_bounds = array<i64: 1, 2, 1>, scalar_prefetch = 0 : i64, scratch_operands = 1 : i64, tpu.core_type = #tpu.core_type<tc>, window_params = [{transform_indices = @transform_0, window_bounds = array<i64: 8, 512>}, {transform_indices = @transform_1, window_bounds = array<i64: 256, 512>}, {transform_indices = @transform_2, window_bounds = array<i64: 1, 256>}, {transform_indices = @transform_3, window_bounds = array<i64: 1, 8, 1>}]} {
    %c0_i32 = arith.constant 0 : i32
    %0 = arith.cmpi eq, %arg2, %c0_i32 : i32
    %1 = arith.extui %0 : i1 to i32
    %c0_i32_0 = arith.constant 0 : i32
    %2 = arith.cmpi ne, %1, %c0_i32_0 : i32
    scf.if %2 {
      %cst_14 = arith.constant 0.000000e+00 : f32
      %19 = vector.broadcast %cst_14 : f32 to vector<8x1xf32>
      %c0_15 = arith.constant 0 : index
      %c0_16 = arith.constant 0 : index
      %20 = vector.load %arg7[%c0_15, %c0_16] : memref<8x1xf32, #tpu.memory_space<vmem>>, vector<8x1xf32>
      tpu.vector_store %arg7[%c0_15, %c0_16], %19 {strides = array<i32>} : memref<8x1xf32, #tpu.memory_space<vmem>>, vector<8x1xf32>,
    } else {
    }
    %c0 = arith.constant 0 : index
    %c0_1 = arith.constant 0 : index
    %3 = vector.load %arg4[%c0, %c0_1] : memref<256x512xf32, #tpu.memory_space<vmem>>, vector<256x512xf32>
    %c0_2 = arith.constant 0 : index
    %c0_3 = arith.constant 0 : index
    %4 = vector.load %arg3[%c0_2, %c0_3] : memref<8x512xf32, #tpu.memory_space<vmem>>, vector<8x512xf32>
    %cst = arith.constant dense<0.000000e+00> : vector<8x256xf32>
    %5 = tpu.matmul %4, %3, %cst {dimension_numbers = #tpu.dot_dimension_numbers<[1], [1], [0], [0], [0, 0, 1, 0], [], []>} : vector<8x512xf32>, vector<256x512xf32>, vector<8x256xf32> -> vector<8x256xf32>
    %cst_4 = arith.constant 0.000000e+00 : f32
    %6 = vector.broadcast %cst_4 : f32 to vector<8x256xf32>
    %7 = arith.maximumf %5, %6 : vector<8x256xf32>
    %c0_5 = arith.constant 0 : index
    %c0_6 = arith.constant 0 : index
    %8 = vector.load %arg7[%c0_5, %c0_6] : memref<8x1xf32, #tpu.memory_space<vmem>>, vector<8x1xf32>
    %c0_7 = arith.constant 0 : index
    %c0_8 = arith.constant 0 : index
    %9 = vector.load %arg5[%c0_7, %c0_8] : memref<1x256xf32, #tpu.memory_space<vmem>>, vector<1x256xf32>
    %10 = vector.broadcast %9 : vector<1x256xf32> to vector<8x256xf32>
    %11 = arith.mulf %7, %10 : vector<8x256xf32>
    %cst_9 = arith.constant dense<0.000000e+00> : vector<8xf32>
    %12 = vector.multi_reduction <add>, %11, %cst_9 [1] : vector<8x256xf32> to vector<8xf32>
    %13 = vector.shape_cast %12 : vector<8xf32> to vector<8x1xf32>
    %14 = arith.addf %8, %13 : vector<8x1xf32>
    %c0_10 = arith.constant 0 : index
    %c0_11 = arith.constant 0 : index
    %15 = vector.load %arg7[%c0_10, %c0_11] : memref<8x1xf32, #tpu.memory_space<vmem>>, vector<8x1xf32>
    tpu.vector_store %arg7[%c0_10, %c0_11], %14 {strides = array<i32>} : memref<8x1xf32, #tpu.memory_space<vmem>>, vector<8x1xf32>,
    %c0_i32_12 = arith.constant 0 : i32
    %16 = arith.cmpi eq, %arg2, %c0_i32_12 : i32
    %17 = arith.extui %16 : i1 to i32
    %c0_i32_13 = arith.constant 0 : i32
    %18 = arith.cmpi ne, %17, %c0_i32_13 : i32
    scf.if %18 {
      %c0_14 = arith.constant 0 : index
      %c0_15 = arith.constant 0 : index
      %19 = vector.load %arg7[%c0_14, %c0_15] : memref<8x1xf32, #tpu.memory_space<vmem>>, vector<8x1xf32>
      %c0_16 = arith.constant 0 : index
      %c0_17 = arith.constant 0 : index
      %c0_18 = arith.constant 0 : index
      %20 = vector.load %arg6[%c0_16, %c0_17, %c0_18] : memref<1x8x1xf32, #tpu.memory_space<vmem>>, vector<1x8x1xf32>
      %21 = vector.shape_cast %20 : vector<1x8x1xf32> to vector<8x1xf32>
      %22 = vector.shape_cast %19 : vector<8x1xf32> to vector<1x8x1xf32>
      tpu.vector_store %arg6[%c0_16, %c0_17, %c0_18], %22 {strides = array<i32>} : memref<1x8x1xf32, #tpu.memory_space<vmem>>, vector<1x8x1xf32>,
    } else {
    }
    return
  }
  func.func @transform_0(%arg0: i32, %arg1: i32, %arg2: i32) -> (i32, i32) {
    %c0_i32 = arith.constant 0 : i32
    %c0_i32_0 = arith.constant 0 : i32
    return %arg0, %c0_i32 : i32, i32
  }
  func.func @transform_1(%arg0: i32, %arg1: i32, %arg2: i32) -> (i32, i32) {
    %c1_i32 = arith.constant 1 : i32
    %0 = arith.muli %arg1, %c1_i32 : i32
    %1 = arith.addi %0, %arg2 : i32
    %c0_i32 = arith.constant 0 : i32
    %c0_i32_0 = arith.constant 0 : i32
    return %1, %c0_i32 : i32, i32
  }
  func.func @transform_2(%arg0: i32, %arg1: i32, %arg2: i32) -> (i32, i32) {
    %c1_i32 = arith.constant 1 : i32
    %0 = arith.muli %arg1, %c1_i32 : i32
    %1 = arith.addi %0, %arg2 : i32
    %c0_i32 = arith.constant 0 : i32
    %c0_i32_0 = arith.constant 0 : i32
    return %c0_i32, %1 : i32, i32
  }
  func.func @transform_3(%arg0: i32, %arg1: i32, %arg2: i32) -> (i32, i32, i32) {
    %c0_i32 = arith.constant 0 : i32
    %c0_i32_0 = arith.constant 0 : i32
    return %arg1, %arg0, %c0_i32 : i32, i32, i32
  }
}

</mosaic_0001>

<bundles_post_ra>
// kernel: tpu_custom_call.1
= control target key start
LH: loop header
LB: loop body
LE: loop exit
PB: predicated region body
PF: predicated region fallthrough
CT: control target
= control target key end

     0   :  { %8 = vsyncpa [#allocation4], 0  ;;  %s1350_s0 = inlined_call_operand.hbm [shape: f32[8,512], index: 0, kind: input, shape index: {}]   ;;  %s1351_s1 = inlined_call_operand.hbm [shape: f32[512,512], index: 1, kind: input, shape index: {}]   ;;  %s1352_s2 = inlined_call_operand.vmem [shape: f32[1,512], index: 2, kind: input, shape index: {}]   ;;  %s1353_s3 = inlined_call_operand.vmem [shape: f32[2,8,1], index: 3, kind: output, shape index: {}]  }
   0x1   :  { %9 = vsyncpa [#allocation6], 0 }
   0x2   :  { %11 = vsyncpa [#allocation6 + $0x1], 0  ;;  %s1043_s12 = smov 0   ;;  %s1045_s13 = smov 0  }
   0x3   :  { %s1047_s14 = smov 0   ;;  %s1049_s15 = smov 0  }
   0x4   :  { %s1051_s16 = smov 0   ;;  %s1053_s17 = smov 0  }
   0x5 LB: > { %s687_s18 = sadd.s32 4294967295, %s1016_s17   ;;  %s71_s19 = sadd.s32 1, %s1004_s14  ;;  %s1016_s17 = sphi %s1053_s17, %s17_s17   ;;  %s1012_s16 = sphi %s1051_s16, %s1373_s16   ;;  %s1008_s15 = sphi %s1049_s15, %s1372_s15   ;;  %s1004_s14 = sphi %s1047_s14, %s1371_s14   ;;  %s1000_s13 = sphi %s1045_s13, %s1370_s13   ;;  %s996_s12 = sphi %s1043_s12, %s1369_s12  }
   0x6   : > { %p78_p0 = scmp.ne.s32.totalorder %s1004_s14, %s1000_s13  ;;  %p79_p1 = scmp.eq.s32.totalorder %s1016_s17, 0 }
   0x7   : > { %p84_p2 = scmp.ne.s32.totalorder %s1000_s13, %s996_s12  ;;  %p1077_p3 = scmp.eq.s32.totalorder %s687_s18, 0 }
   0x8   : > { %p80_p4 = por %p79_p1, %p78_p0  ;;  %p689_p5 = scmp.ge.s32.totalorder %s1016_s17, 1 }
   0x9   : > { %s1359_s20 = scalar_select %p1077_p3, 1, 0 }
   0xa   : > { %p1084_p6 = por %p1077_p3, %p84_p2  ;;  %p151_p7 = scmp.lt.s32.totalorder %s1016_s17, 3 }
   0xb   : > { %s1018_s23 = smov [#allocation3]   ;;  %p850_p10 = scmp.lt.s32.totalorder %s1016_s17, 2 }
   0xc   : > { %s1360_s21 = scalar_select %p1084_p6, 1, 0 }
   0xd   : > { %p1089_p8 = pnand %p689_p5, %p151_p7  ;;  %s167_s24 = sshll.u32 %s1018_s23, 4  ;;  %s168_s24 = int_to_ptr.vmem [resolvable:$true] %s167_s24 }
   0xe   : > { %s178_s25 = sand.u32 1, %s1004_s14   ;;  %p1103_p12 = pnand %p850_p10, %p80_p4 }
   0xf   : > { %s1361_s22 = scalar_select %p1089_p8, 1, 0 }
  0x10   : > { %p841_p9 = pneg %p1089_p8  ;;  %s904_s30 = scalar_lea.hbm %s1350_s0, 512 }
  0x11   : > { %s1363_s27 = scalar_select %p1103_p12, 1, 0 }
  0x12   : > { %p1099_p11 = pnand %p841_p9, %p1077_p3  ;;  %p905_p13 = scmp.ne.s32.totalorder %s1350_s0, %s904_s30 }
  0x13   : > { %p911_p5 = scmp.lt.u32.totalorder %s904_s30, %s1350_s0 }
  0x14   : > { %p906_p0 = pneg %p1099_p11 }
  0x16   : > { %p907_p1 = pnand %p906_p0, %p905_p13 }
  0x18   : > { %p908_p2 = pneg %p907_p1 }
  0x1a   : > { %p913_p4 = pnand %p911_p5, %p908_p2 }
  0x1c   : > { %916 = shalt.err (!%p913_p4)
}
  0x1d   : > { %s917_s8 = scalar_lea.vmem %s168_s24, 512  ;;  %p925_p6 = scmp.lt.s32.totalorder %s168_s24, %s168_s24 }
  0x1e   : > { %p918_p7 = scmp.ne.s32.totalorder %s168_s24, %s917_s8  ;;  %p926_p3 = scmp.lt.s32.totalorder %s917_s8, %s917_s8 }
  0x20   : > { %p920_p9 = pnand %p918_p7, %p906_p0  ;;  %p927_p8 = por %p926_p3, %p925_p6 }
  0x22   : > { %p921_p10 = pneg %p920_p9 }
  0x24   : > { %p928_p12 = pnand %p927_p8, %p921_p10 }
  0x26   : > { %931 = shalt.err (!%p928_p12)
}
  0x27   : > { %844 = dma.hbm_to_vmem [thread:$0]  (!%p1099_p11), %s1350_s0, 512, %s168_s24, [#allocation4]  }
  0x28   : > { %s32_s11 = sadd.s32 1, %s1012_s16  ;;  %s692_s12 = sshll.u32 %s178_s25, 10 }
  0x29   : > { %p34_p13 = scmp.ge.s32.totalorder %s32_s11, 2  ;;  %s704_s18 = sshll.u32 %s1012_s16, 14 }
  0x2a   : > { %s182_s23 = scalar_lea.vmem [#allocation5], %s692_s12  ;;  %s1132_s30 = scalar_lea.hbm %s1351_s1, %s704_s18 }
  0x2b   : > { %s191_s28 = sshll.u32 %s182_s23, 4  ;;  %s1375_s11 = smov (%p34_p13, %s32_s11), 0  ;;  %s1134_s28 = int_to_ptr.vmem [resolvable:$true] %s191_s28 }
  0x2c   : > { %s68_s24 = ssub.s32 %s1012_s16, %s1375_s11  ;;  %s1144_s5 = scalar_lea.sflag [#allocation6], %s178_s25 }
  0x2d   : > { %p1138_p3 = scmp.eq.s32.totalorder %s68_s24, 0  ;;  %s932_s6 = scalar_lea.hbm %s1132_s30, 16384 }
  0x2e   : > { %p933_p6 = scmp.ne.s32.totalorder %s1132_s30, %s932_s6  ;;  %p1365_p8 = scmp.ne.s32.totalorder %s1363_s27, 0 }
  0x2f   : > { %s937_s9 = scalar_lea.hbm %s1351_s1, 32768  ;;  %p938_p1 = scmp.lt.u32.totalorder %s1132_s30, %s1351_s1 }
  0x30   : > { %p934_p11 = pneg %p1365_p8  ;;  %p939_p2 = scmp.lt.u32.totalorder %s937_s9, %s932_s6 }
  0x31   : > { %p941_p4 = scmp.lt.u32.totalorder %s932_s6, %s1132_s30 }
  0x32   : > { %p935_p12 = pnand %p934_p11, %p933_p6  ;;  %p940_p5 = por %p939_p2, %p938_p1 }
  0x34   : > { %p936_p0 = pneg %p935_p12  ;;  %p942_p7 = por %p941_p4, %p940_p5 }
  0x36   : > { %p943_p9 = pnand %p942_p7, %p936_p0 }
  0x38   : > { %946 = shalt.err (!%p943_p9)
}
  0x39   : > { %s947_s25 = scalar_lea.vmem %s1134_s28, 16384  ;;  %s1019_s18 = smov [#allocation5]  }
  0x3a   : > { %p948_p10 = scmp.ne.s32.totalorder %s1134_s28, %s947_s25  ;;  %s952_s23 = sshll.u32 %s1019_s18, 4  ;;  %s953_s23 = int_to_ptr.vmem [resolvable:$false] %s952_s23 }
  0x3b   : > { %s954_s26 = scalar_lea.vmem %s953_s23, 32768  ;;  %p955_p12 = scmp.lt.s32.totalorder %s1134_s28, %s953_s23 }
  0x3c   : > { %p950_p13 = pnand %p948_p10, %p934_p11  ;;  %p956_p1 = scmp.lt.s32.totalorder %s954_s26, %s947_s25 }
  0x3e   : > { %p951_p6 = pneg %p950_p13  ;;  %p957_p2 = por %p956_p1, %p955_p12 }
  0x40   : > { %p958_p5 = pnand %p957_p2, %p951_p6 }
  0x42   : > { %961 = shalt.err (!%p958_p5)
}
  0x43   : > { %s1020_s29 = smov 512   ;;  %s1021_s24 = smov 32  }
  0x44   : > { %848 = dma.hbm_to_vmem [thread:$0]  (!%p1365_p8), %s1132_s30, 16384, %s1134_s28, %s1144_s5, %s1020_s29, %s1020_s29, %s1021_s24  }
  0x45   : > { %s1177_s6 = scalar_select %p1138_p3, %s1004_s14, %s71_s19  }
  0x46   : > { %p1366_p11 = scmp.ne.s32.totalorder %s1361_s22, 0 }
  0x47   : > { %p1367_p0 = scmp.ne.s32.totalorder (!%p1366_p11), %s1359_s20, 0 }
  0x48   : > { %213 = sbr.rel (%p1366_p11) target bundleno = 591 (0x24f), region = 32 }
  0x4f   : > { %987 = dma.done.wait (%p1367_p0), [#allocation4], 512  }
  0x50   : > { %989 = vsyncadd (%p1367_p0), [#allocation4], 4294966784  ;;  %s219_s7 = sand.u32 1, %s1000_s13   ;;  %p1368_p8 = scmp.ne.s32.totalorder %s1360_s21, 0 }
  0x51   : > { %s698_s8 = sshll.u32 %s219_s7, 10  ;;  %s220_s9 = scalar_lea.sflag [#allocation6], %s219_s7 }
  0x52   : > { %s1186_s27 = scalar_lea.vmem [#allocation5], %s698_s8 }
  0x53   : > { %991 = dma.done.wait (%p1368_p8), %s220_s9, 16384  }
  0x54   : > { %993 = vsyncadd (%p1368_p8), %s220_s9, 4294950912  ;;  %v276_v0 = vld [vmem:[%s1186_s27 + $0x8] sm:$0xff]  ;;  %v278_v2 = vld [vmem:[%s1186_s27 + $0x18] sm:$0xff]  ;;  %vm273_vm0 = vcmask 7168   ;;  %s699_s19 = sshll.u32 %s1008_s15, 1  ;;  %p262_p4 = scmp.lt.s32.totalorder %s1008_s15, 1 }
  0x55   : > { %v280_v1 = vld [vmem:[%s1186_s27 + $0x28] sm:$0xff]  ;;  %v282_v4 = vld [vmem:[%s1186_s27 + $0x38] sm:$0xff]  ;;  %v275_v5 = vld [vmem:[%s1186_s27] sm:$0xff]  ;;  %p257_p3 = scmp.lt.s32.totalorder %s699_s19, 3 }
  0x56   : > { %v705_v3 = vpack.c.bf16 %v280_v1, %v276_v0  ;;  %v279_v6 = vld [vmem:[%s1186_s27 + $0x20] sm:$0xff]  ;;  %v769_v7 = vpack.c.bf16 %v282_v4, %v278_v2  ;;  %v277_v9 = vld [vmem:[%s1186_s27 + $0x10] sm:$0xff]  ;;  %v284_v11 = vld [vmem:[%s1186_s27 + $0x48] sm:$0xff]  ;;  %s1379_s15 = smov (!%p262_p4, %s1008_s15), 1 }
  0x57   : > { %v707_v8 = vpack.c.bf16 %v279_v6, %v275_v5  ;;  %v281_v10 = vld [vmem:[%s1186_s27 + $0x30] sm:$0xff]  ;;  %v288_v13 = vld [vmem:[%s1186_s27 + $0x68] sm:$0xff]  ;;  %v286_v14 = vld [vmem:[%s1186_s27 + $0x58] sm:$0xff]  ;;  %s1377_s19 = smov (!%p257_p3, %s699_s19), 3  ;;  %s700_s28 = sshll.u32 %s1379_s15, 3 }
  0x58   : > { %706 = vmatprep.subr.bf16.mxu1 %v705_v3  ;;  %v771_v12 = vpack.c.bf16 %v281_v10, %v277_v9  ;;  %v290_v15 = vld [vmem:[%s1186_s27 + $0x78] sm:$0xff]  ;;  %770 = vmatprep.subr.bf16.mxu0 %v769_v7  ;;  %v709_v16 = vpack.c.bf16 %v288_v13, %v284_v11  ;;  %v283_v18 = vld [vmem:[%s1186_s27 + $0x40] sm:$0xff]  ;;  %v285_v20 = vld [vmem:[%s1186_s27 + $0x50] sm:$0xff]  ;;  %s259_s22 = scalar_lea.vmem %s1352_s2, %s1377_s19  ;;  %s268_s5 = scalar_lea.vmem %s1353_s3, %s700_s28 }
  0x59   : > { %708 = vmatpush1.bf16.xpose.msra.mxu1 %v707_v8  ;;  %v773_v17 = vpack.c.bf16 %v290_v15, %v286_v14  ;;  %v287_v19 = vld [vmem:[%s1186_s27 + $0x60] sm:$0xff]  ;;  %v289_v21 = vld [vmem:[%s1186_s27 + $0x70] sm:$0xff]  ;;  %v292_v22 = vld [vmem:[%s1186_s27 + $0x88] sm:$0xff] }
  0x5a   : > { %772 = vmatpush1.bf16.xpose.msra.mxu0 %v771_v12  ;;  %710 = vmatprep.subr.bf16.mxu1 %v709_v16  ;;  %v296_v23 = vld [vmem:[%s1186_s27 + $0xa8] sm:$0xff]  ;;  %v294_v24 = vld [vmem:[%s1186_s27 + $0x98] sm:$0xff]  ;;  %v711_v26 = vpack.c.bf16 %v287_v19, %v283_v18  ;;  %v775_v27 = vpack.c.bf16 %v289_v21, %v285_v20  ;;  %v291_v30 = vld [vmem:[%s1186_s27 + $0x80] sm:$0xff] }
  0x5b   : > { %774 = vmatprep.subr.bf16.mxu0 %v773_v17  ;;  %v298_v25 = vld [vmem:[%s1186_s27 + $0xb8] sm:$0xff]  ;;  %v713_v28 = vpack.c.bf16 %v296_v23, %v292_v22  ;;  %v295_v31 = vld [vmem:[%s1186_s27 + $0xa0] sm:$0xff]  ;;  %v293_v32 = vld [vmem:[%s1186_s27 + $0x90] sm:$0xff] }
  0x5c   : > { %v777_v29 = vpack.c.bf16 %v298_v25, %v294_v24  ;;  %v297_v33 = vld [vmem:[%s1186_s27 + $0xb0] sm:$0xff]  ;;  %v300_v34 = vld [vmem:[%s1186_s27 + $0xc8] sm:$0xff]  ;;  %v302_v36 = vld [vmem:[%s1186_s27 + $0xd8] sm:$0xff]  ;;  %v715_v38 = vpack.c.bf16 %v295_v31, %v291_v30 }
  0x5d   : > { %v304_v35 = vld [vmem:[%s1186_s27 + $0xe8] sm:$0xff]  ;;  %v306_v37 = vld [vmem:[%s1186_s27 + $0xf8] sm:$0xff]  ;;  %v779_v39 = vpack.c.bf16 %v297_v33, %v293_v32  ;;  %v299_v42 = vld [vmem:[%s1186_s27 + $0xc0] sm:$0xff] }
  0x5e   : > { %v717_v40 = vpack.c.bf16 %v304_v35, %v300_v34  ;;  %v781_v41 = vpack.c.bf16 %v306_v37, %v302_v36  ;;  %v303_v43 = vld [vmem:[%s1186_s27 + $0xe0] sm:$0xff]  ;;  %v301_v44 = vld [vmem:[%s1186_s27 + $0xd0] sm:$0xff]  ;;  %v308_v46 = vld [vmem:[%s1186_s27 + $0x108] sm:$0xff] }
  0x5f   : > { %v305_v45 = vld [vmem:[%s1186_s27 + $0xf0] sm:$0xff]  ;;  %v312_v47 = vld [vmem:[%s1186_s27 + $0x128] sm:$0xff]  ;;  %v310_v48 = vld [vmem:[%s1186_s27 + $0x118] sm:$0xff]  ;;  %v719_v50 = vpack.c.bf16 %v303_v43, %v299_v42 }
  0x60   : > { %v314_v49 = vld [vmem:[%s1186_s27 + $0x138] sm:$0xff]  ;;  %v783_v51 = vpack.c.bf16 %v305_v45, %v301_v44  ;;  %v721_v52 = vpack.c.bf16 %v312_v47, %v308_v46  ;;  %v307_v54 = vld [vmem:[%s1186_s27 + $0x100] sm:$0xff]  ;;  %v309_v56 = vld [vmem:[%s1186_s27 + $0x110] sm:$0xff] }
  0x61   : > { %712 = vmatpush1.bf16.xpose.msra.mxu1 %v711_v26  ;;  %v785_v53 = vpack.c.bf16 %v314_v49, %v310_v48  ;;  %v311_v55 = vld [vmem:[%s1186_s27 + $0x120] sm:$0xff]  ;;  %v313_v57 = vld [vmem:[%s1186_s27 + $0x130] sm:$0xff]  ;;  %v316_v58 = vld [vmem:[%s1186_s27 + $0x148] sm:$0xff] }
  0x62   : > { %776 = vmatpush1.bf16.xpose.msra.mxu0 %v775_v27  ;;  %714 = vmatprep.subr.bf16.mxu1 %v713_v28  ;;  %v320_v59 = vld [vmem:[%s1186_s27 + $0x168] sm:$0xff]  ;;  %v318_v60 = vld [vmem:[%s1186_s27 + $0x158] sm:$0xff]  ;;  %v723_v62 = vpack.c.bf16 %v311_v55, %v307_v54  ;;  %v787_v63 = vpack.c.bf16 %v313_v57, %v309_v56  ;;  %v315_v2 = vld [vmem:[%s1186_s27 + $0x140] sm:$0xff] }
  0x63   : > { %778 = vmatprep.subr.bf16.mxu0 %v777_v29  ;;  %v322_v61 = vld [vmem:[%s1186_s27 + $0x178] sm:$0xff]  ;;  %v725_v0 = vpack.c.bf16 %v320_v59, %v316_v58  ;;  %v319_v3 = vld [vmem:[%s1186_s27 + $0x160] sm:$0xff]  ;;  %v317_v4 = vld [vmem:[%s1186_s27 + $0x150] sm:$0xff] }
  0x64   : > { %v789_v1 = vpack.c.bf16 %v322_v61, %v318_v60  ;;  %v321_v5 = vld [vmem:[%s1186_s27 + $0x170] sm:$0xff]  ;;  %v324_v6 = vld [vmem:[%s1186_s27 + $0x188] sm:$0xff]  ;;  %v326_v8 = vld [vmem:[%s1186_s27 + $0x198] sm:$0xff]  ;;  %v727_v10 = vpack.c.bf16 %v319_v3, %v315_v2 }
  0x65   : > { %v328_v7 = vld [vmem:[%s1186_s27 + $0x1a8] sm:$0xff]  ;;  %v330_v9 = vld [vmem:[%s1186_s27 + $0x1b8] sm:$0xff]  ;;  %v791_v11 = vpack.c.bf16 %v321_v5, %v317_v4  ;;  %v323_v16 = vld [vmem:[%s1186_s27 + $0x180] sm:$0xff] }
  0x66   : > { %v729_v12 = vpack.c.bf16 %v328_v7, %v324_v6  ;;  %v793_v13 = vpack.c.bf16 %v330_v9, %v326_v8  ;;  %v404_v14 = vld [vmem:[#allocation3 + $0x8] sm:$0xff]  ;;  %v406_v15 = vld [vmem:[#allocation3 + $0x18] sm:$0xff]  ;;  %v327_v17 = vld [vmem:[%s1186_s27 + $0x1a0] sm:$0xff] }
  0x67   : > { %471 = vmatprep.mubr.f32.mxu1 %v404_v14  ;;  %542 = vmatprep.mubr.f32.mxu0 %v406_v15  ;;  %v325_v18 = vld [vmem:[%s1186_s27 + $0x190] sm:$0xff]  ;;  %v332_v20 = vld [vmem:[%s1186_s27 + $0x1c8] sm:$0xff]  ;;  %v334_v22 = vld [vmem:[%s1186_s27 + $0x1d8] sm:$0xff]  ;;  %v731_v24 = vpack.c.bf16 %v327_v17, %v323_v16 }
  0x68   : > { %v329_v19 = vld [vmem:[%s1186_s27 + $0x1b0] sm:$0xff]  ;;  %v336_v21 = vld [vmem:[%s1186_s27 + $0x1e8] sm:$0xff]  ;;  %v338_v23 = vld [vmem:[%s1186_s27 + $0x1f8] sm:$0xff] }
  0x69   : > { %716 = vmatpush1.bf16.xpose.msra.mxu1 %v715_v38  ;;  %v795_v25 = vpack.c.bf16 %v329_v19, %v325_v18  ;;  %v733_v26 = vpack.c.bf16 %v336_v21, %v332_v20  ;;  %v797_v27 = vpack.c.bf16 %v338_v23, %v334_v22  ;;  %v331_v28 = vld [vmem:[%s1186_s27 + $0x1c0] sm:$0xff]  ;;  %v333_v30 = vld [vmem:[%s1186_s27 + $0x1d0] sm:$0xff]  ;;  %v340_v32 = vld [vmem:[%s1186_s27 + $0x208] sm:$0xff] }
  0x6a   : > { %780 = vmatpush1.bf16.xpose.msra.mxu0 %v779_v39  ;;  %718 = vmatprep.subr.bf16.mxu1 %v717_v40  ;;  %v335_v29 = vld [vmem:[%s1186_s27 + $0x1e0] sm:$0xff]  ;;  %v337_v31 = vld [vmem:[%s1186_s27 + $0x1f0] sm:$0xff]  ;;  %v344_v33 = vld [vmem:[%s1186_s27 + $0x228] sm:$0xff] }
  0x6b   : > { %782 = vmatprep.subr.bf16.mxu0 %v781_v41  ;;  %v342_v34 = vld [vmem:[%s1186_s27 + $0x218] sm:$0xff]  ;;  %v735_v36 = vpack.c.bf16 %v335_v29, %v331_v28  ;;  %v799_v37 = vpack.c.bf16 %v337_v31, %v333_v30  ;;  %v737_v38 = vpack.c.bf16 %v344_v33, %v340_v32  ;;  %v339_v40 = vld [vmem:[%s1186_s27 + $0x200] sm:$0xff]  ;;  %v341_v42 = vld [vmem:[%s1186_s27 + $0x210] sm:$0xff] }
  0x6c   : > { %v346_v35 = vld [vmem:[%s1186_s27 + $0x238] sm:$0xff]  ;;  %v343_v41 = vld [vmem:[%s1186_s27 + $0x220] sm:$0xff]  ;;  %v345_v43 = vld [vmem:[%s1186_s27 + $0x230] sm:$0xff] }
  0x6d   : > { %v801_v39 = vpack.c.bf16 %v346_v35, %v342_v34  ;;  %v348_v44 = vld [vmem:[%s1186_s27 + $0x248] sm:$0xff]  ;;  %v350_v46 = vld [vmem:[%s1186_s27 + $0x258] sm:$0xff]  ;;  %v739_v48 = vpack.c.bf16 %v343_v41, %v339_v40  ;;  %v803_v49 = vpack.c.bf16 %v345_v43, %v341_v42  ;;  %v349_v54 = vld [vmem:[%s1186_s27 + $0x250] sm:$0xff] }
  0x6e   : > { %v352_v45 = vld [vmem:[%s1186_s27 + $0x268] sm:$0xff]  ;;  %v354_v47 = vld [vmem:[%s1186_s27 + $0x278] sm:$0xff]  ;;  %v353_v55 = vld [vmem:[%s1186_s27 + $0x270] sm:$0xff] }
  0x6f   : > { %v356_v56 = vld [vmem:[%s1186_s27 + $0x288] sm:$0xff]  ;;  %v358_v58 = vld [vmem:[%s1186_s27 + $0x298] sm:$0xff]  ;;  %v807_v61 = vpack.c.bf16 %v353_v55, %v349_v54  ;;  %v357_v2 = vld [vmem:[%s1186_s27 + $0x290] sm:$0xff] }
  0x70   : > { %v360_v57 = vld [vmem:[%s1186_s27 + $0x2a8] sm:$0xff]  ;;  %v362_v59 = vld [vmem:[%s1186_s27 + $0x2b8] sm:$0xff]  ;;  %v361_v3 = vld [vmem:[%s1186_s27 + $0x2b0] sm:$0xff] }
  0x71   : > { %720 = vmatpush1.bf16.xpose.msra.mxu1 %v719_v50  ;;  %v741_v50 = vpack.c.bf16 %v352_v45, %v348_v44  ;;  %v364_v4 = vld [vmem:[%s1186_s27 + $0x2c8] sm:$0xff]  ;;  %v366_v6 = vld [vmem:[%s1186_s27 + $0x2d8] sm:$0xff]  ;;  %v811_v9 = vpack.c.bf16 %v361_v3, %v357_v2  ;;  %v365_v14 = vld [vmem:[%s1186_s27 + $0x2d0] sm:$0xff] }
  0x72   : > { %784 = vmatpush1.bf16.xpose.msra.mxu0 %v783_v51  ;;  %722 = vmatprep.subr.bf16.mxu1 %v721_v52  ;;  %v805_v51 = vpack.c.bf16 %v354_v47, %v350_v46  ;;  %v347_v52 = vld [vmem:[%s1186_s27 + $0x240] sm:$0xff]  ;;  %v368_v5 = vld [vmem:[%s1186_s27 + $0x2e8] sm:$0xff]  ;;  %v370_v7 = vld [vmem:[%s1186_s27 + $0x2f8] sm:$0xff] }
  0x73   : > { %786 = vmatprep.subr.bf16.mxu0 %v785_v53  ;;  %v351_v53 = vld [vmem:[%s1186_s27 + $0x260] sm:$0xff]  ;;  %v369_v15 = vld [vmem:[%s1186_s27 + $0x2f0] sm:$0xff]  ;;  %v372_v16 = vld [vmem:[%s1186_s27 + $0x308] sm:$0xff] }
  0x74   : > { %v743_v60 = vpack.c.bf16 %v351_v53, %v347_v52  ;;  %v376_v17 = vld [vmem:[%s1186_s27 + $0x328] sm:$0xff]  ;;  %v374_v18 = vld [vmem:[%s1186_s27 + $0x318] sm:$0xff]  ;;  %v815_v21 = vpack.c.bf16 %v369_v15, %v365_v14  ;;  %v403_v2 = vld [vmem:[#allocation3] sm:$0xff] }
  0x75   : > { %v378_v19 = vld [vmem:[%s1186_s27 + $0x338] sm:$0xff]  ;;  %v753_v22 = vpack.c.bf16 %v376_v17, %v372_v16  ;;  %v380_v28 = vld [vmem:[%s1186_s27 + $0x348] sm:$0xff]  ;;  %v405_v3 = vld [vmem:[#allocation3 + $0x10] sm:$0xff] }
  0x76   : > { %v817_v23 = vpack.c.bf16 %v378_v19, %v374_v18  ;;  %v384_v29 = vld [vmem:[%s1186_s27 + $0x368] sm:$0xff]  ;;  %v382_v30 = vld [vmem:[%s1186_s27 + $0x358] sm:$0xff] }
  0x77   : > { %v386_v31 = vld [vmem:[%s1186_s27 + $0x378] sm:$0xff]  ;;  %v757_v34 = vpack.c.bf16 %v384_v29, %v380_v28  ;;  %v388_v40 = vld [vmem:[%s1186_s27 + $0x388] sm:$0xff] }
  0x78   : > { %v821_v35 = vpack.c.bf16 %v386_v31, %v382_v30  ;;  %v392_v41 = vld [vmem:[%s1186_s27 + $0x3a8] sm:$0xff]  ;;  %v390_v42 = vld [vmem:[%s1186_s27 + $0x398] sm:$0xff] }
  0x79   : > { %724 = vmatpush1.bf16.xpose.msra.mxu1 %v723_v62  ;;  %v745_v62 = vpack.c.bf16 %v360_v57, %v356_v56  ;;  %v394_v43 = vld [vmem:[%s1186_s27 + $0x3b8] sm:$0xff]  ;;  %v761_v46 = vpack.c.bf16 %v392_v41, %v388_v40  ;;  %v396_v52 = vld [vmem:[%s1186_s27 + $0x3c8] sm:$0xff] }
  0x7a   : > { %788 = vmatpush1.bf16.xpose.msra.mxu0 %v787_v63  ;;  %726 = vmatprep.subr.bf16.mxu1 %v725_v0  ;;  %v809_v63 = vpack.c.bf16 %v362_v59, %v358_v58  ;;  %v355_v0 = vld [vmem:[%s1186_s27 + $0x280] sm:$0xff]  ;;  %v825_v47 = vpack.c.bf16 %v394_v43, %v390_v42  ;;  %v400_v53 = vld [vmem:[%s1186_s27 + $0x3e8] sm:$0xff]  ;;  %v398_v54 = vld [vmem:[%s1186_s27 + $0x3d8] sm:$0xff] }
  0x7b   : > { %790 = vmatprep.subr.bf16.mxu0 %v789_v1  ;;  %v359_v1 = vld [vmem:[%s1186_s27 + $0x2a0] sm:$0xff]  ;;  %v402_v55 = vld [vmem:[%s1186_s27 + $0x3f8] sm:$0xff]  ;;  %v765_v58 = vpack.c.bf16 %v400_v53, %v396_v52 }
  0x7c   : > { %v747_v8 = vpack.c.bf16 %v359_v1, %v355_v0  ;;  %v829_v59 = vpack.c.bf16 %v402_v55, %v398_v54 }
  0x81   : > { %728 = vmatpush1.bf16.xpose.msra.mxu1 %v727_v10  ;;  %v749_v10 = vpack.c.bf16 %v368_v5, %v364_v4  ;;  %v1022_v4 = vmov 0.0   ;;  %v554_v5 = vlaneseq }
  0x82   : > { %792 = vmatpush1.bf16.xpose.msra.mxu0 %v791_v11  ;;  %730 = vmatprep.subr.bf16.mxu1 %v729_v12  ;;  %v813_v11 = vpack.c.bf16 %v370_v7, %v366_v6  ;;  %v363_v12 = vld [vmem:[%s1186_s27 + $0x2c0] sm:$0xff]  ;;  %274 = vst.msk [vmem:[#allocation2] sm:$0xff] %vm273_vm0, %v1022_v4 }
  0x83   : > { %794 = vmatprep.subr.bf16.mxu0 %v793_v13  ;;  %v367_v13 = vld [vmem:[%s1186_s27 + $0x2e0] sm:$0xff]  ;;  %v555_v6 = vshrl.u32 %v554_v5, 7 }
  0x84   : > { %v751_v20 = vpack.c.bf16 %v367_v13, %v363_v12 }
  0x85   : > { %v556_v7 = vsub.s32 0, %v555_v6 }
  0x89   : > { %732 = vmatpush1.bf16.xpose.msra.mxu1 %v731_v24  ;;  %v371_v24 = vld [vmem:[%s1186_s27 + $0x300] sm:$0xff] }
  0x8a   : > { %796 = vmatpush1.bf16.xpose.msra.mxu0 %v795_v25  ;;  %734 = vmatprep.subr.bf16.mxu1 %v733_v26  ;;  %v375_v25 = vld [vmem:[%s1186_s27 + $0x320] sm:$0xff]  ;;  %v373_v26 = vld [vmem:[%s1186_s27 + $0x310] sm:$0xff] }
  0x8b   : > { %798 = vmatprep.subr.bf16.mxu0 %v797_v27  ;;  %v377_v27 = vld [vmem:[%s1186_s27 + $0x330] sm:$0xff]  ;;  %v755_v32 = vpack.c.bf16 %v375_v25, %v371_v24 }
  0x8c   : > { %v819_v33 = vpack.c.bf16 %v377_v27, %v373_v26 }
  0x91   : > { %736 = vmatpush1.bf16.xpose.msra.mxu1 %v735_v36  ;;  %v379_v36 = vld [vmem:[%s1186_s27 + $0x340] sm:$0xff] }
  0x92   : > { %800 = vmatpush1.bf16.xpose.msra.mxu0 %v799_v37  ;;  %738 = vmatprep.subr.bf16.mxu1 %v737_v38  ;;  %v383_v37 = vld [vmem:[%s1186_s27 + $0x360] sm:$0xff]  ;;  %v381_v38 = vld [vmem:[%s1186_s27 + $0x350] sm:$0xff] }
  0x93   : > { %802 = vmatprep.subr.bf16.mxu0 %v801_v39  ;;  %v385_v39 = vld [vmem:[%s1186_s27 + $0x370] sm:$0xff]  ;;  %v759_v44 = vpack.c.bf16 %v383_v37, %v379_v36 }
  0x94   : > { %v823_v45 = vpack.c.bf16 %v385_v39, %v381_v38 }
  0x99   : > { %740 = vmatpush1.bf16.xpose.msra.mxu1 %v739_v48  ;;  %v387_v48 = vld [vmem:[%s1186_s27 + $0x380] sm:$0xff] }
  0x9a   : > { %804 = vmatpush1.bf16.xpose.msra.mxu0 %v803_v49  ;;  %742 = vmatprep.subr.bf16.mxu1 %v741_v50  ;;  %v391_v49 = vld [vmem:[%s1186_s27 + $0x3a0] sm:$0xff]  ;;  %v389_v50 = vld [vmem:[%s1186_s27 + $0x390] sm:$0xff] }
  0x9b   : > { %806 = vmatprep.subr.bf16.mxu0 %v805_v51  ;;  %v393_v51 = vld [vmem:[%s1186_s27 + $0x3b0] sm:$0xff]  ;;  %v763_v56 = vpack.c.bf16 %v391_v49, %v387_v48 }
  0x9c   : > { %v827_v57 = vpack.c.bf16 %v393_v51, %v389_v50 }
  0xa1   : > { %744 = vmatpush1.bf16.xpose.msra.mxu1 %v743_v60  ;;  %v395_v60 = vld [vmem:[%s1186_s27 + $0x3c0] sm:$0xff] }
  0xa2   : > { %808 = vmatpush1.bf16.xpose.msra.mxu0 %v807_v61  ;;  %746 = vmatprep.subr.bf16.mxu1 %v745_v62  ;;  %v399_v61 = vld [vmem:[%s1186_s27 + $0x3e0] sm:$0xff]  ;;  %v397_v62 = vld [vmem:[%s1186_s27 + $0x3d0] sm:$0xff] }
  0xa3   : > { %810 = vmatprep.subr.bf16.mxu0 %v809_v63  ;;  %v401_v63 = vld [vmem:[%s1186_s27 + $0x3f0] sm:$0xff]  ;;  %v767_v0 = vpack.c.bf16 %v399_v61, %v395_v60 }
  0xa4   : > { %v831_v1 = vpack.c.bf16 %v401_v63, %v397_v62 }
  0xa9   : > { %748 = vmatpush1.bf16.xpose.msra.mxu1 %v747_v8  ;;  %v552_v8 = vld [vmem:[%s259_s22] sm:$0x3] }
  0xaa   : > { %812 = vmatpush1.bf16.xpose.msra.mxu0 %v811_v9  ;;  %750 = vmatprep.subr.bf16.mxu1 %v749_v10  ;;  %v560_v9 = vsub.s32 1, %v555_v6  ;;  %v557_v15 = vrot.slane %v552_v8, %v556_v7 }
  0xab   : > { %814 = vmatprep.subr.bf16.mxu0 %v813_v11 }
  0xac   : > { %v561_v17 = vrot.slane %v552_v8, %v560_v9 }
  0xb1   : > { %752 = vmatpush1.bf16.xpose.msra.mxu1 %v751_v20 }
  0xb2   : > { %816 = vmatpush1.bf16.xpose.msra.mxu0 %v815_v21  ;;  %754 = vmatprep.subr.bf16.mxu1 %v753_v22 }
  0xb3   : > { %818 = vmatprep.subr.bf16.mxu0 %v817_v23  ;;  %v551_v23 = vld [vmem:[#allocation2] sm:$0xff] }
  0xb9   : > { %756 = vmatpush1.bf16.xpose.msra.mxu1 %v755_v32 }
  0xba   : > { %820 = vmatpush1.bf16.xpose.msra.mxu0 %v819_v33  ;;  %758 = vmatprep.subr.bf16.mxu1 %v757_v34 }
  0xbb   : > { %822 = vmatprep.subr.bf16.mxu0 %v821_v35 }
  0xc1   : > { %760 = vmatpush1.bf16.xpose.msra.mxu1 %v759_v44 }
  0xc2   : > { %824 = vmatpush1.bf16.xpose.msra.mxu0 %v823_v45  ;;  %762 = vmatprep.subr.bf16.mxu1 %v761_v46 }
  0xc3   : > { %826 = vmatprep.subr.bf16.mxu0 %v825_v47 }
  0xc9   : > { %764 = vmatpush1.bf16.xpose.msra.mxu1 %v763_v56 }
  0xca   : > { %828 = vmatpush1.bf16.xpose.msra.mxu0 %v827_v57  ;;  %766 = vmatprep.subr.bf16.mxu1 %v765_v58 }
  0xcb   : > { %830 = vmatprep.subr.bf16.mxu0 %v829_v59 }
  0xd1   : > { %768 = vmatpush1.bf16.xpose.msra.mxu1 %v767_v0 }
  0xd2   : > { %832 = vmatpush1.bf16.xpose.msra.mxu0 %v831_v1 }
  0xd8   : > { %472 = vmatmul.mubr.f32.vlgmr.msra.gmra.mrb[0].mxu1 %v403_v2 }
  0xd9   : > { %543 = vmatmul.mubr.f32.vlgmr.msra.gmra.mrb[0].mxu0 %v405_v3 }
 0x1ab   : > { %v473_v10 = vpop.f32.mrb[0].mxu1 }
 0x1ac   : > { %v544_v11 = vpop.f32.mrb[0].mxu0  ;;  %v475_v12 = vpop.f32.mrb[1].mxu1 }
 0x1ad   : > { %v545_v13 = vadd.f32 %v544_v11, %v473_v10  ;;  %v546_v14 = vpop.f32.mrb[1].mxu0 }
 0x1ae   : > { %v547_v16 = vadd.f32 %v546_v14, %v475_v12 }
 0x1af   : > { %v549_v18 = vmax.f32 %v545_v13, 0.0 }
 0x1b0   : > { %v550_v19 = vmax.f32 %v547_v16, 0.0 }
 0x1b1   : > { %v564_v20 = vmul.f32 %v557_v15, %v549_v18 }
 0x1b2   : > { %v565_v21 = vmul.f32 %v561_v17, %v550_v19 }
 0x1b4   : > { %v566_v22 = vadd.f32 %v565_v21, %v564_v20 }
 0x1b6   : > { %567 = vadd.xlane.f32.xlu0 %v566_v22 }
 0x243   : > { %v568_v24 = vpop.xlane.xlu0 %567 }
 0x244   : > { %v569_v25 = vadd.f32 %v568_v24, %v551_v23 }
 0x246   : > { %571 = vst.msk [vmem:[#allocation2] sm:$0xff] %vm273_vm0, %v569_v25 }
 0x24d   : > { %v575_v26 = vld [vmem:[#allocation2] sm:$0xff] }
 0x24e   : > { %576 = vst.msk [vmem:[%s268_s5] sm:$0xff] %vm273_vm0, %v575_v26 }
 0x24f PF: > { %s17_s17 = sadd.s32 1, %s1016_s17   ;;  %s1369_s12 = smov %s1000_s13 }
 0x250   : > { %p14_p7 = scmp.ge.s32.totalorder %s17_s17, 4   ;;  %s1370_s13 = smov %s1004_s14 }
 0x251   : > { %s1371_s14 = smov %s1177_s6  ;;  %s1372_s15 = smov %s1012_s16 }
 0x252   : > { %s1373_s16 = smov %s1375_s11  ;;  %16 = sbr.rel (!%p14_p7) target bundleno = 5 (0x5), region = 89 }
 0x259   :  { %602 = vsyncpa [#allocation4], 1 }
 0x25a   :  { %604 = vsyncpa [#allocation4 + $0x1], 1 }
 0x25b   :  { %605 = vsyncpa [#allocation6], 1 }
 0x25c   :  { %607 = vsyncpa [#allocation6 + $0x1], 1 }

</bundles_post_ra>
